<compile_context>
chip_gen: v5e
topology: v5e:2x2
jax: 0.10.0
libtpu: 0.0.40
codegen_flags: <defaults>
</compile_context>

<pallas_src>
import functools
import math

import jax
import jax.numpy as jnp
from jax.experimental import pallas as pl
from jax.experimental.pallas import tpu as pltpu


def _init_params(cutoff_lower, cutoff_upper, num_rbf, dtype=jnp.float32):
    """Deterministic parameter init matching ExpNormalSmearing._initial_params."""
    start_value = math.exp(-cutoff_upper + cutoff_lower)
    means = jnp.linspace(start_value, 1.0, num_rbf, dtype=dtype)
    betas = jnp.full(
        (num_rbf,), (2.0 / num_rbf * (1.0 - start_value)) ** (-2), dtype=dtype
    )
    return means, betas


def _num_tensorcores():
    """Best-effort TensorCores-per-chip (v7x=2, v5e/v6e=1). Never raises."""
    try:
        info = pltpu.get_tpu_info()
    except Exception:
        return 1
    for attr in (
        "num_cores",
        "tensorcores_per_chip",
        "tensor_cores_per_chip",
        "cores_per_chip",
        "num_tensorcores",
    ):
        v = getattr(info, attr, None)
        if v is None:
            continue
        try:
            v = int(v)
        except (TypeError, ValueError):
            continue
        if 0 < v <= 8:
            return v
    return 1


def _choose_tile_n(n, tile_n_max, num_tensorcores):
    """Pick a lane tile: multiple of 128, as large as possible.

    On single-TC chips (v5e/v6e) always take the largest tile that fits the
    cap; on multi-TC chips (v7x) keep at least 2 * num_cores grid steps so the
    "parallel" grid axis can shard across cores and still pipeline.
    """
    n128 = pl.cdiv(max(n, 1), 128) * 128
    tile = min(int(tile_n_max), n128)
    if num_tensorcores > 1:
        min_steps = 2 * num_tensorcores
        if n128 >= min_steps * 128:
            tile = min(tile, max(128, ((n128 // min_steps) // 128) * 128))
    return max(128, (tile // 128) * 128)


def _smearing_kernel(d_ref, m_ref, nb_ref, o_ref, *,
                     alpha, cutoff_lower, cutoff_upper, compute_dtype):
    d = d_ref[...]           # (1, tile_n)      distances on the lane axis
    m = m_ref[...]           # (num_rbf, 1)     means on the sublane axis
    nb = nb_ref[...]         # (num_rbf, 1)     pre-negated betas

    # CosineCutoff(0, cutoff_upper) — exactly the branch the module constructs.
    # Full 128-lane-wide EUP ops on the (1, tile_n) distance vregs.
    cut = 0.5 * (jnp.cos(d * (math.pi / cutoff_upper)) + 1.0)
    cut = jnp.where(d < cutoff_upper, cut, 0.0)                  # (1, tile_n)

    e = jnp.exp(alpha * (cutoff_lower - d))                      # (1, tile_n)
    g = e - m                                                    # (num_rbf, tile_n)
    arg = nb * g * g                                             # betas pre-negated

    if compute_dtype == jnp.dtype(jnp.float32):
        out = cut * jnp.exp(arg)
    else:
        # Low-precision tail: the big (num_rbf, tile) exp + final multiply run
        # at bf16 EUP/VPU rate (opt-in; do not use on v5e — no bf16 VPU/EUP).
        out = cut.astype(compute_dtype) * jnp.exp(arg.astype(compute_dtype))
    o_ref[...] = out.astype(o_ref.dtype)


def exp_normal_smearing(dist, means, betas, *,
                        cutoff_lower=0.0, cutoff_upper=5.0,
                        tile_n=8192, out_dtype=None, compute_dtype=jnp.float32,
                        transposed_output=True):
    """ExpNormalSmearing forward.

    dist: any shape (flattened internally to N elements).
    Returns:
      transposed_output=True  (default): lane-dense (num_rbf, N) slab — no XLA
        transpose, recommended for fused consumers.
      transposed_output=False: dist.shape + (num_rbf,), the exact PyTorch
        layout (adds an XLA transpose costing >= 2x the kernel's HBM traffic).
    out_dtype=None keeps dist.dtype (f32 by default, matching PyTorch);
    out_dtype=jnp.bfloat16 halves HBM writeback on write-bound chips.
    """
    orig_shape = dist.shape
    d = dist.astype(jnp.float32).reshape(1, -1)
    N = int(d.shape[1])
    num_rbf = int(means.shape[0])
    alpha = 5.0 / (cutoff_upper - cutoff_lower)

    if out_dtype is None:
        out_dtype = dist.dtype
    out_dtype = jnp.dtype(out_dtype)
    compute_dtype = jnp.dtype(compute_dtype)

    tile = _choose_tile_n(N, tile_n, _num_tensorcores())
    grid_n = pl.cdiv(N, tile)

    m2 = means.astype(jnp.float32).reshape(num_rbf, 1)
    nb2 = (-betas.astype(jnp.float32)).reshape(num_rbf, 1)   # pre-negated

    kernel = functools.partial(
        _smearing_kernel,
        alpha=alpha,
        cutoff_lower=cutoff_lower,
        cutoff_upper=cutoff_upper,
        compute_dtype=compute_dtype,
    )

    cost = pl.CostEstimate(
        flops=5 * num_rbf * N,
        transcendentals=(num_rbf + 2) * N,
        bytes_accessed=4 * N + 2 * 4 * num_rbf + num_rbf * N * out_dtype.itemsize,
    )

    out_t = pl.pallas_call(
        kernel,
        out_shape=jax.ShapeDtypeStruct((num_rbf, N), out_dtype),
        grid_spec=pltpu.PrefetchScalarGridSpec(
            num_scalar_prefetch=0,
            grid=(grid_n,),
            in_specs=[
                pl.BlockSpec((1, tile), lambda i: (0, i)),        # dist (lane axis)
                pl.BlockSpec((num_rbf, 1), lambda i: (0, 0)),     # means (bcast)
                pl.BlockSpec((num_rbf, 1), lambda i: (0, 0)),     # -betas (bcast)
            ],
            out_specs=pl.BlockSpec((num_rbf, tile), lambda i: (0, i)),
        ),
        compiler_params=pltpu.CompilerParams(
            dimension_semantics=("parallel",),
        ),
        cost_estimate=cost,
    )(d, m2, nb2)

    if transposed_output:
        return out_t                                   # (num_rbf, N) lane-dense
    # Exact PyTorch layout — the transpose re-streams the whole slab through HBM.
    return out_t.T.reshape(*orig_shape, num_rbf)


def exp_normal_smearing_ref(dist, means, betas, *, cutoff_lower=0.0, cutoff_upper=5.0):
    """Pure-JAX reference mirroring the PyTorch forward exactly.

    Note: the module builds CosineCutoff(0, cutoff_upper), so the cutoff always
    uses the cutoff_lower==0 branch regardless of the module's cutoff_lower.
    """
    alpha = 5.0 / (cutoff_upper - cutoff_lower)
    d = dist.astype(jnp.float32)[..., None]
    cutoffs = 0.5 * (jnp.cos(d * math.pi / cutoff_upper) + 1.0)
    cutoffs = cutoffs * (d < cutoff_upper).astype(jnp.float32)
    return cutoffs * jnp.exp(
        -betas * (jnp.exp(alpha * (-d + cutoff_lower)) - means) ** 2
    )


if __name__ == "__main__":
    num_rbf = 50
    N = 1000  # deliberately NOT a multiple of 128 to exercise the ragged last block

    key = jax.random.PRNGKey(0)

    for cutoff_lower, cutoff_upper in [(0.0, 5.0), (1.0, 5.0)]:
        # distances in [0, cutoff_upper + 1) so some fall past the cutoff
        dist = jax.random.uniform(
            key, (N,), dtype=jnp.float32, minval=0.0, maxval=cutoff_upper + 1.0
        )
        means, betas = _init_params(cutoff_lower, cutoff_upper, num_rbf)
        ref = exp_normal_smearing_ref(
            dist, means, betas, cutoff_lower=cutoff_lower, cutoff_upper=cutoff_upper
        )

        # Default: lane-dense (num_rbf, N) slab, no XLA transpose.
        out_t = jax.block_until_ready(
            exp_normal_smearing(
                dist, means, betas,
                cutoff_lower=cutoff_lower, cutoff_upper=cutoff_upper,
            )
        )
        assert out_t.shape == (num_rbf, N)
        assert jnp.allclose(out_t.T, ref, atol=1e-5, rtol=1e-5)

        # PyTorch-layout path: (N, num_rbf), identical values.
        out = jax.block_until_ready(
            exp_normal_smearing(
                dist, means, betas,
                cutoff_lower=cutoff_lower, cutoff_upper=cutoff_upper,
                transposed_output=False,
            )
        )
        assert out.shape == (N, num_rbf)
        assert jnp.allclose(out, ref, atol=1e-5, rtol=1e-5)

    # Opt-in low-precision path (bf16 output + bf16 exp) with loosened tolerance.
    cutoff_lower, cutoff_upper = 0.0, 5.0
    dist = jax.random.uniform(
        key, (N,), dtype=jnp.float32, minval=0.0, maxval=cutoff_upper + 1.0
    )
    means, betas = _init_params(cutoff_lower, cutoff_upper, num_rbf)
    ref = exp_normal_smearing_ref(
        dist, means, betas, cutoff_lower=cutoff_lower, cutoff_upper=cutoff_upper
    )
    out_bf16 = jax.block_until_ready(
        exp_normal_smearing(
            dist, means, betas,
            cutoff_lower=cutoff_lower, cutoff_upper=cutoff_upper,
            out_dtype=jnp.bfloat16, compute_dtype=jnp.bfloat16,
        )
    )
    assert out_bf16.shape == (num_rbf, N) and out_bf16.dtype == jnp.bfloat16
    assert jnp.allclose(out_bf16.T.astype(jnp.float32), ref, atol=2e-2, rtol=0)

    print("KERNEL_OK")
</pallas_src>

<mosaic_0001>
module attributes {stable_mosaic.version = 11 : i64} {
  func.func @_smearing_kernel(%arg0: i32, %arg1: memref<1x1024xf32, #tpu.memory_space<vmem>>, %arg2: memref<50x1xf32, #tpu.memory_space<vmem>>, %arg3: memref<50x1xf32, #tpu.memory_space<vmem>>, %arg4: memref<50x1024xf32, #tpu.memory_space<vmem>>) attributes {dimension_semantics = [#tpu.dimension_semantics<parallel>], iteration_bounds = array<i64: 1>, scalar_prefetch = 0 : i64, scratch_operands = 0 : i64, tpu.core_type = #tpu.core_type<tc>, window_params = [{transform_indices = @transform_0, window_bounds = array<i64: 1, 1024>}, {pipeline_mode = #tpu.pipeline_mode<synchronous>, transform_indices = @transform_1, window_bounds = array<i64: 50, 1>}, {pipeline_mode = #tpu.pipeline_mode<synchronous>, transform_indices = @transform_2, window_bounds = array<i64: 50, 1>}, {transform_indices = @transform_3, window_bounds = array<i64: 50, 1024>}]} {
    %c0 = arith.constant 0 : index
    %c0_0 = arith.constant 0 : index
    %0 = vector.load %arg1[%c0, %c0_0] : memref<1x1024xf32, #tpu.memory_space<vmem>>, vector<1x1024xf32>
    %c0_1 = arith.constant 0 : index
    %c0_2 = arith.constant 0 : index
    %1 = vector.load %arg2[%c0_1, %c0_2] : memref<50x1xf32, #tpu.memory_space<vmem>>, vector<50x1xf32>
    %c0_3 = arith.constant 0 : index
    %c0_4 = arith.constant 0 : index
    %2 = vector.load %arg3[%c0_3, %c0_4] : memref<50x1xf32, #tpu.memory_space<vmem>>, vector<50x1xf32>
    %cst = arith.constant 0.628318548 : f32
    %3 = vector.broadcast %cst : f32 to vector<1x1024xf32>
    %4 = arith.mulf %0, %3 : vector<1x1024xf32>
    %5 = math.cos %4 : vector<1x1024xf32>
    %cst_5 = arith.constant 1.000000e+00 : f32
    %6 = vector.broadcast %cst_5 : f32 to vector<1x1024xf32>
    %7 = arith.addf %5, %6 : vector<1x1024xf32>
    %cst_6 = arith.constant 5.000000e-01 : f32
    %8 = vector.broadcast %cst_6 : f32 to vector<1x1024xf32>
    %9 = arith.mulf %8, %7 : vector<1x1024xf32>
    %cst_7 = arith.constant 5.000000e+00 : f32
    %10 = vector.broadcast %cst_7 : f32 to vector<1x1024xf32>
    %11 = arith.cmpf olt, %0, %10 : vector<1x1024xf32>
    %cst_8 = arith.constant 0.000000e+00 : f32
    %12 = vector.broadcast %cst_8 : f32 to vector<1x1024xf32>
    %13 = arith.select %11, %9, %12 : vector<1x1024xi1>, vector<1x1024xf32>
    %cst_9 = arith.constant 0.000000e+00 : f32
    %14 = vector.broadcast %cst_9 : f32 to vector<1x1024xf32>
    %15 = arith.subf %14, %0 : vector<1x1024xf32>
    %cst_10 = arith.constant 1.000000e+00 : f32
    %16 = vector.broadcast %cst_10 : f32 to vector<1x1024xf32>
    %17 = arith.mulf %16, %15 : vector<1x1024xf32>
    %18 = math.exp %17 : vector<1x1024xf32>
    %19 = vector.broadcast %18 : vector<1x1024xf32> to vector<50x1024xf32>
    %20 = vector.broadcast %1 : vector<50x1xf32> to vector<50x1024xf32>
    %21 = arith.subf %19, %20 : vector<50x1024xf32>
    %22 = vector.broadcast %2 : vector<50x1xf32> to vector<50x1024xf32>
    %23 = arith.mulf %22, %21 : vector<50x1024xf32>
    %24 = arith.mulf %23, %21 : vector<50x1024xf32>
    %25 = math.exp %24 : vector<50x1024xf32>
    %26 = vector.broadcast %13 : vector<1x1024xf32> to vector<50x1024xf32>
    %27 = arith.mulf %26, %25 : vector<50x1024xf32>
    %c0_11 = arith.constant 0 : index
    %c0_12 = arith.constant 0 : index
    %28 = vector.load %arg4[%c0_11, %c0_12] : memref<50x1024xf32, #tpu.memory_space<vmem>>, vector<50x1024xf32>
    tpu.vector_store %arg4[%c0_11, %c0_12], %27 {strides = array<i32>} : memref<50x1024xf32, #tpu.memory_space<vmem>>, vector<50x1024xf32>,
    return
  }
  func.func @transform_0(%arg0: i32) -> (i32, i32) {
    %c0_i32 = arith.constant 0 : i32
    %c0_i32_0 = arith.constant 0 : i32
    return %c0_i32, %arg0 : i32, i32
  }
  func.func @transform_1(%arg0: i32) -> (i32, i32) {
    %c0_i32 = arith.constant 0 : i32
    %c0_i32_0 = arith.constant 0 : i32
    %c0_i32_1 = arith.constant 0 : i32
    return %c0_i32, %c0_i32_0 : i32, i32
  }
  func.func @transform_2(%arg0: i32) -> (i32, i32) {
    %c0_i32 = arith.constant 0 : i32
    %c0_i32_0 = arith.constant 0 : i32
    %c0_i32_1 = arith.constant 0 : i32
    return %c0_i32, %c0_i32_0 : i32, i32
  }
  func.func @transform_3(%arg0: i32) -> (i32, i32) {
    %c0_i32 = arith.constant 0 : i32
    %c0_i32_0 = arith.constant 0 : i32
    return %c0_i32, %arg0 : i32, i32
  }
}

</mosaic_0001>

<bundles_post_ra>
// kernel: tpu_custom_call.1
= control target key start
LH: loop header
LB: loop body
LE: loop exit
PB: predicated region body
PF: predicated region fallthrough
CT: control target
= control target key end

     0   :  { %v862_v1 = vmov 0   ;;  %s1276_s0 = inlined_call_operand.vmem [shape: f32[1,1000], index: 0, kind: input, shape index: {}]   ;;  %s1277_s1 = inlined_call_operand.vmem [shape: f32[50,1], index: 1, kind: input, shape index: {}]   ;;  %s1278_s2 = inlined_call_operand.vmem [shape: f32[50,1], index: 2, kind: input, shape index: {}]   ;;  %s1279_s3 = inlined_call_operand.hbm [shape: f32[50,1000], index: 3, kind: output, shape index: {}]  }
   0x1   :  { %v895_v0 = vld [vmem:[%s1276_s0] sm:$0xff]  ;;  %720 = vset.pattern.permute.xlu1 %v862_v1  ;;  %719 = vset.pattern.permute.xlu0 %v862_v1  ;;  %v18_v3 = vld [vmem:[%s1277_s1 + $0x10] sm:$0xff]  ;;  %v19_v10 = vld [vmem:[%s1277_s1 + $0x18] sm:$0xff] }
   0x2   :  { %v899_v2 = vmul.f32 0.62831855, %v895_v0  ;;  %v16_v4 = vld [vmem:[%s1277_s1] sm:$0xff]  ;;  %721 = vset.pattern.permute.xlu2 %v862_v1  ;;  %221 = vperm.xlu1 %720, %v18_v3   ;;  %v17_v11 = vld [vmem:[%s1277_s1 + $0x8] sm:$0xff] }
   0x3   :  { %211 = vperm.xlu0 %719, %v16_v4   ;;  %v20_v6 = vld [vmem:[%s1277_s1 + $0x20] sm:$0xff] }
   0x4   :  { %v34_v5 = vand.u32 2139095040, %v899_v2  ;;  %231 = vperm.xlu2 %721, %v20_v6   ;;  %v31_v8 = vand.u32 2147483647, %v899_v2 }
   0x6   :  { %v35_v7 = vshrl.u32 %v34_v5, 23 }
   0x8   :  { %v706_v9 = vadd.s32 4294967169, %v35_v7 }
   0x9   :  { %8 = vsyncpa [#allocation3], 0  ;;  %v21_v13 = vld [vmem:[%s1277_s1 + $0x28] sm:$0xff]  ;;  %v38_v14 = vand.u32 8388607, %v31_v8  ;;  %v23_v30 = vld [vmem:[%s1278_s2] sm:$0xff] }
   0xa   :  { %v41_v12 = vadd.s32 1, %v706_v9  ;;  %226 = vperm.xlu1 %720, %v19_v10   ;;  %v863_v20 = vmov 683565275   ;;  %v864_v22 = vmov 2475754826   ;;  %v24_v35 = vld [vmem:[%s1278_s2 + $0x8] sm:$0xff] }
   0xb   :  { %216 = vperm.xlu0 %719, %v17_v11   ;;  %v39_v17 = vor.u32 8388608, %v38_v14  ;;  %v865_v24 = vmov 2131351028   ;;  %v866_v26 = vmov 2102212464   ;;  %v26_v55 = vld [vmem:[%s1278_s2 + $0x18] sm:$0xff] }
   0xc   :  { %vm42_vm0 = vcmp.gt.s32.totalorder %v41_v12, 0  ;;  %236 = vperm.xlu2 %721, %v21_v13   ;;  %v867_v28 = vmov 920167782   ;;  %v22_v31 = vld [vmem:[%s1277_s1 + $0x30] sm:$0x3]  ;;  %v27_v61 = vld [vmem:[%s1278_s2 + $0x20] sm:$0xff] }
   0xd   :  { %v43_v15 = vsel %vm42_vm0, %v41_v12, 0  ;;  %v868_v37 = vmov 1326507024   ;;  %v937_v39 = vshll.u32 %v39_v17, 8  ;;  %v25_v60 = vld [vmem:[%s1278_s2 + $0x10] sm:$0xff]  ;;  %vm33_vm12 = vcmp.lt.s32.totalorder %v899_v2, 0 }
   0xe   :  { %v45_v16 = vand.u32 31, %v43_v15  ;;  %v925_v18 = vshrl.u32 %v43_v15, 5  ;;  %vm991_vm13 = vcmp.le.f32.partialorder %v31_v8, 0.7853982  ;;  %s694_s16 = sshll.u32 %s1279_s3, 4  ;;  %s870_s3 = smov 1024   ;;  %s695_s16 = int_to_ptr.hbm [resolvable:$true] %s694_s16 }
   0xf   :  { %v80_v51 = vand.u32 65535, %v937_v39  ;;  %v81_v52 = vshrl.u32 %v937_v39, 16  ;;  %s871_s17 = smov 64  }
  0x10   :  { %v46_v19 = vsub.s32 32, %v45_v16  ;;  %v48_v21 = vshll.u32 %v863_v20, %v45_v16  ;;  %v51_v23 = vshll.u32 %v864_v22, %v45_v16  ;;  %v54_v25 = vshll.u32 %v865_v24, %v45_v16 }
  0x11   :  { %v57_v27 = vshll.u32 %v866_v26, %v45_v16  ;;  %v60_v29 = vshll.u32 %v867_v28, %v45_v16  ;;  %vm63_vm1 = vcmp.lt.s32.totalorder %v925_v18, 1  ;;  %vm66_vm2 = vcmp.lt.s32.totalorder %v925_v18, 4 }
  0x12   :  { %v49_v32 = vshrl.u32 %v864_v22, %v46_v19  ;;  %v52_v33 = vshrl.u32 %v865_v24, %v46_v19  ;;  %v55_v34 = vshrl.u32 %v866_v26, %v46_v19  ;;  %v58_v36 = vshrl.u32 %v867_v28, %v46_v19  ;;  %302 = vperm.xlu1 %720, %v23_v30  }
  0x13   :  { %v61_v38 = vshrl.u32 %v868_v37, %v46_v19  ;;  %241 = vperm.xlu0 %719, %v22_v31   ;;  %vm65_vm3 = vcmp.lt.s32.totalorder %v925_v18, 3  ;;  %vm64_vm4 = vcmp.lt.s32.totalorder %v925_v18, 2  ;;  %v47_v62 = vshrl.u32 %v863_v20, %v46_v19 }
  0x14   :  { %v50_v40 = vor.u32 %v49_v32, %v48_v21  ;;  %v53_v41 = vor.u32 %v52_v33, %v51_v23  ;;  %v56_v42 = vor.u32 %v55_v34, %v54_v25  ;;  %v59_v43 = vor.u32 %v58_v36, %v57_v27  ;;  %307 = vperm.xlu2 %721, %v24_v35   ;;  %v29_v21 = vld [vmem:[%s1278_s2 + $0x30] sm:$0x3]  ;;  %v28_v25 = vld [vmem:[%s1278_s2 + $0x28] sm:$0xff]  ;;  %s869_s2 = smov [#allocation2]  }
  0x15   :  { %v62_v44 = vor.u32 %v61_v38, %v60_v29  ;;  %s692_s13 = sshll.u32 %s869_s2, 4  ;;  %s693_s13 = int_to_ptr.vmem [resolvable:$true] %s692_s13 }
  0x16   :  { %v71_v45 = vsel %vm63_vm1, %v50_v40, %v53_v41  ;;  %v75_v46 = vsel %vm63_vm1, %v53_v41, %v56_v42  ;;  %v72_v47 = vsel %vm66_vm2, %v59_v43, 920167782  ;;  %v67_v15 = vsel %vm63_vm1, %v47_v62, %v50_v40 }
  0x17   :  { %v76_v48 = vsel %vm66_vm2, %v62_v44, 1326507024  ;;  %v73_v49 = vsel %vm65_vm3, %v56_v42, %v72_v47  ;;  %v68_v17 = vsel %vm66_vm2, %v56_v42, 2102212464  ;;  %vm174_vm1 = vweird.f32 %v899_v2 }
  0x18   :  { %v77_v50 = vsel %vm65_vm3, %v59_v43, %v76_v48  ;;  %v74_v53 = vsel %vm64_vm4, %v71_v45, %v73_v49  ;;  %v69_v29 = vsel %vm65_vm3, %v53_v41, %v68_v17  ;;  %vm187_vm2 = vcmp.lt.f32.partialorder %v895_v0, 5.0 }
  0x19   :  { %v78_v54 = vsel %vm64_vm4, %v75_v46, %v77_v50  ;;  %v104_v58 = vand.u32 65535, %v74_v53  ;;  %v105_v59 = vshrl.u32 %v74_v53, 16  ;;  %v70_v37 = vsel %vm64_vm4, %v67_v15, %v69_v29 }
  0x1a   :  { %v82_v56 = vand.u32 65535, %v78_v54  ;;  %v83_v57 = vshrl.u32 %v78_v54, 16  ;;  %317 = vperm.xlu1 %720, %v26_v55   ;;  %v124_v43 = vmul.u32 %v937_v39, %v70_v37 }
  0x1b   :  { %v106_v5 = vmul.u32 %v104_v58, %v80_v51  ;;  %v107_v6 = vmul.u32 %v105_v59, %v80_v51  ;;  %v108_v7 = vmul.u32 %v104_v58, %v81_v52  ;;  %312 = vperm.xlu0 %719, %v25_v60   ;;  %v109_v12 = vmul.u32 %v105_v59, %v81_v52 }
  0x1c   :  { %v84_v63 = vmul.u32 %v82_v56, %v80_v51  ;;  %v85_v3 = vmul.u32 %v83_v57, %v80_v51  ;;  %v86_v4 = vmul.u32 %v82_v56, %v81_v52  ;;  %v87_v9 = vmul.u32 %v83_v57, %v81_v52  ;;  %322 = vperm.xlu2 %721, %v27_v61  }
  0x1d   :  { %v110_v13 = vshll.u32 %v107_v6, 16  ;;  %v112_v14 = vshll.u32 %v108_v7, 16  ;;  %v111_v27 = vshrl.u32 %v107_v6, 16  ;;  %v113_v33 = vshrl.u32 %v108_v7, 16 }
  0x1e   :  { %v88_v10 = vshll.u32 %v85_v3, 16  ;;  %v90_v11 = vshll.u32 %v86_v4, 16  ;;  %v89_v22 = vshrl.u32 %v85_v3, 16  ;;  %v91_v30 = vshrl.u32 %v86_v4, 16 }
  0x1f   :  { %vm114_vm6 = vc.u32 %v106_v5, %v110_v13  ;;  %v116_v20 = vadd.s32 %v110_v13, %v106_v5 }
  0x20   :  { %vm92_vm5 = vc.u32 %v84_v63, %v88_v10  ;;  %v94_v16 = vadd.s32 %v88_v10, %v84_v63  ;;  %v115_v24 = vsel %vm114_vm6, 1, %v862_v1 }
  0x21   :  { %v93_v19 = vsel %vm92_vm5, 1, %v862_v1  ;;  %v117_v28 = vadd.s32 %v115_v24, %v109_v12  ;;  %vm118_vm8 = vc.u32 %v116_v20, %v112_v14  ;;  %v120_v36 = vadd.s32 %v116_v20, %v112_v14 }
  0x22   :  { %v95_v23 = vadd.s32 %v93_v19, %v87_v9  ;;  %vm96_vm7 = vc.u32 %v94_v16, %v90_v11  ;;  %v119_v32 = vsel %vm118_vm8, 1, %v862_v1  ;;  %332 = vperm.xlu1 %720, %v29_v21  }
  0x23   :  { %v97_v26 = vsel %vm96_vm7, 1, %v862_v1  ;;  %v121_v34 = vadd.s32 %v119_v32, %v117_v28  ;;  %327 = vperm.xlu0 %719, %v28_v25  }
  0x24   :  { %v99_v31 = vadd.s32 %v97_v26, %v95_v23 }
  0x25   :  { %v122_v38 = vadd.s32 %v121_v34, %v111_v27  ;;  %v189_v27 = vsub.f32 0.0, %v895_v0 }
  0x26   :  { %v100_v35 = vadd.s32 %v99_v31, %v89_v22 }
  0x27   :  { %v123_v42 = vadd.s32 %v122_v38, %v113_v33  ;;  %v190_v32 = vmul.f32 1.442695, %v189_v27 }
  0x28   :  { %v101_v40 = vadd.s32 %v100_v35, %v91_v30 }
  0x29   :  { %v127_v41 = vadd.s32 1, %v123_v42  ;;  %722 = vpow2.f32 %v190_v32 }
  0x2a   :  { %vm126_vm9 = vc.u32 %v101_v40, %v120_v36  ;;  %v125_v18 = vadd.s32 %v120_v36, %v101_v40 }
  0x2b   :  { %v128_v44 = vsel %vm126_vm9, %v127_v41, %v123_v42 }
  0x2c   :  { %v129_v45 = vadd.s32 %v128_v44, %v124_v43 }
  0x2e   :  { %v130_v46 = vadd.s32 536870912, %v129_v45 }
  0x2f   :  { %v723_v37 = vpop.eup %722 }
  0x30   :  { %v131_v1 = vshrl.u32 %v130_v46, 30  ;;  %v1007_v42 = vperm.slane %v723_v37, 0  ;;  %v1009_v43 = vperm.slane %v723_v37, 1  ;;  %v1011_v41 = vperm.slane %v723_v37, 2 }
  0x31   :  { %v1013_v44 = vperm.slane %v723_v37, 3  ;;  %v1017_v46 = vperm.slane %v723_v37, 5 }
  0x32   :  { %v132_v47 = vshll.u32 %v131_v1, 30  ;;  %v155_v6 = vsub.s32 4, %v131_v1  ;;  %1302 = vst [vmem:[#allocation6_spill] sm:$0xff] %v1007_v42 }
  0x33   :  { %1303 = vst [vmem:[#allocation7_spill] sm:$0xff] %v1009_v43 }
  0x34   :  { %v133_v48 = vsub.s32 %v129_v45, %v132_v47  ;;  %v156_v12 = vsel %vm33_vm12, %v155_v6, %v131_v1  ;;  %1304 = vst [vmem:[#allocation8_spill] sm:$0xff] %v1011_v41  ;;  %v1019_v1 = vperm.slane %v723_v37, 6  ;;  %v1021_v47 = vperm.slane %v723_v37, 7 }
  0x35   :  { %v158_v15 = vsel %vm991_vm13, 0, %v156_v12  ;;  %1305 = vst [vmem:[#allocation9_spill] sm:$0xff] %v1013_v44 }
  0x36   :  { %vm134_vm10 = vcmp.lt.s32.totalorder %v133_v48, 0  ;;  %v135_v49 = vsub.s32 0, %v133_v48  ;;  %v175_v20 = vand.u32 3, %v158_v15  ;;  %1307 = vst [vmem:[#allocation11_spill] sm:$0xff] %v1017_v46 }
  0x37   :  { %1308 = vst [vmem:[#allocation12_spill] sm:$0xff] %v1019_v1 }
  0x38   :  { %v136_v50 = vsel %vm134_vm10, %v135_v49, %v133_v48  ;;  %vm180_vm14 = vcmp.eq.s32.totalorder %v175_v20, 2  ;;  %vm177_vm15 = vcmp.eq.s32.totalorder %v175_v20, 0  ;;  %vm176_vm0 = vcmp.lt.s32.totalorder %v175_v20, 2  ;;  %1309 = vst [vmem:[#allocation13_spill] sm:$0xff] %v1021_v47 }
  0x39   :  { %v137_v51 = vclz %v136_v50 }
  0x3b   :  { %v707_v52 = vadd.s32 4294967294, %v137_v51 }
  0x3d   :  { %vm708_vm11 = vcmp.lt.s32.totalorder %v707_v52, 0 }
  0x3e   :  { %v140_v53 = vsel %vm708_vm11, 0, %v707_v52 }
  0x3f   :  { %v141_v54 = vsub.s32 32, %v140_v53  ;;  %v142_v55 = vshll.u32 %v133_v48, %v140_v53  ;;  %v145_v56 = vsub.s32 4294967266, %v140_v53 }
  0x41   :  { %v143_v39 = vshrl.u32 %v125_v18, %v141_v54  ;;  %v146_v57 = vadd.s32 127, %v145_v56 }
  0x43   :  { %v144_v58 = vor.u32 %v143_v39, %v142_v55  ;;  %v147_v59 = vshll.u32 %v146_v57, 23 }
  0x45   :  { %v148_v60 = vor.u32 4788187, %v147_v59  ;;  %v151_v61 = vcvt.s32.f32 %v144_v58 }
  0x47   :  { %v149_v62 = vand.u32 2147483647, %v148_v60 }
  0x49   :  { %v152_v63 = vmul.f32 %v151_v61, %v149_v62 }
  0x4b   :  { %v153_v4 = vxor.u32 2147483648, %v152_v63 }
  0x4d   :  { %v154_v5 = vsel %vm33_vm12, %v153_v4, %v152_v63 }
  0x4e   :  { %v157_v7 = vsel %vm991_vm13, %v899_v2, %v154_v5  ;;  %v1015_v2 = vperm.slane %v723_v37, 4 }
  0x4f   :  { %v159_v9 = vmul.f32 %v157_v7, %v157_v7 }
  0x50   :  { %1306 = vst [vmem:[#allocation10_spill] sm:$0xff] %v1015_v2 }
  0x51   :  { %v160_v10 = vmul.f32 -0.001358992, %v159_v9  ;;  %v167_v11 = vmul.f32 -0.00019511016, %v159_v9 }
  0x53   :  { %v161_v13 = vadd.f32 0.041655596, %v160_v10  ;;  %v168_v14 = vadd.f32 0.008332121, %v167_v11 }
  0x55   :  { %v162_v8 = vmul.f32 %v161_v13, %v159_v9  ;;  %v169_v16 = vmul.f32 %v168_v14, %v159_v9 }
  0x57   :  { %v163_v17 = vadd.f32 -0.4999988, %v162_v8  ;;  %v170_v19 = vadd.f32 -0.16666654, %v169_v16 }
  0x59   :  { %v164_v21 = vmul.f32 %v163_v17, %v159_v9  ;;  %v171_v22 = vmul.f32 %v170_v19, %v159_v9 }
  0x5b   :  { %v165_v23 = vadd.f32 1.0, %v164_v21  ;;  %v172_v24 = vadd.f32 1.0, %v171_v22 }
  0x5d   :  { %v173_v25 = vmul.f32 %v172_v24, %v157_v7  ;;  %v181_v26 = vxor.u32 2147483648, %v165_v23 }
  0x5e   :  { %v232_v28 = vpop.permute.xlu2 %231 }
  0x5f   :  { %v178_v29 = vxor.u32 2147483648, %v173_v25  ;;  %v182_v30 = vsel %vm180_vm14, %v181_v26, %v173_v25  ;;  %v276_v0 = vsub.f32 %v1007_v42, %v232_v28  ;;  %v277_v48 = vsub.f32 %v1009_v43, %v232_v28 }
  0x60   :  { %v278_v49 = vsub.f32 %v1011_v41, %v232_v28  ;;  %v279_v50 = vsub.f32 %v1013_v44, %v232_v28  ;;  %v280_v51 = vsub.f32 %v1015_v2, %v232_v28  ;;  %v281_v52 = vsub.f32 %v1017_v46, %v232_v28 }
  0x61   :  { %v179_v31 = vsel %vm177_vm15, %v165_v23, %v178_v29  ;;  %v282_v18 = vsub.f32 %v1019_v1, %v232_v28  ;;  %v283_v53 = vsub.f32 %v1021_v47, %v232_v28 }
  0x62   :  { %v183_v33 = vsel %vm176_vm0, %v179_v31, %v182_v30 }
  0x63   :  { %v184_v34 = vsel %vm174_vm1, nan, %v183_v33 }
  0x64   :  { %v185_v36 = vadd.f32 1.0, %v184_v34 }
  0x66   :  { %v1002_v35 = vpop.permute.xlu2 %236  ;;  %v186_v38 = vmul.f32 0.5, %v185_v36 }
  0x67   :  { %1301 = vst [vmem:[#allocation5_spill] sm:$0xff] %v1002_v35 }
  0x68   :  { %v188_v45 = vsel %vm187_vm2, %v186_v38, 0.0 }
  0x69   :  { %v1031_v54 = vperm.slane %v188_v45, 0  ;;  %v1033_v55 = vperm.slane %v188_v45, 1  ;;  %v1035_v56 = vperm.slane %v188_v45, 2  ;;  %v1037_v39 = vperm.slane %v188_v45, 3 }
  0x6a   :  { %v1039_v59 = vperm.slane %v188_v45, 4  ;;  %v1041_v60 = vperm.slane %v188_v45, 5  ;;  %v1043_v61 = vperm.slane %v188_v45, 6  ;;  %v1045_v62 = vperm.slane %v188_v45, 7 }
  0x6e   :  { %v1005_v40 = vpop.permute.xlu2 %307 }
  0x74   :  { %v222_v57 = vpop.permute.xlu1 %221 }
  0x75   :  { %v212_v58 = vpop.permute.xlu0 %211  ;;  %v1048_v63 = vsub.f32 %v1007_v42, %v222_v57  ;;  %v1051_v3 = vsub.f32 %v1009_v43, %v222_v57  ;;  %v1054_v4 = vsub.f32 %v1011_v41, %v222_v57  ;;  %v1057_v5 = vsub.f32 %v1013_v44, %v222_v57 }
  0x76   :  { %v1060_v6 = vsub.f32 %v1015_v2, %v222_v57  ;;  %v1063_v7 = vsub.f32 %v1017_v46, %v222_v57  ;;  %v1066_v9 = vsub.f32 %v1019_v1, %v222_v57  ;;  %v1069_v10 = vsub.f32 %v1021_v47, %v222_v57  ;;  %v323_v11 = vpop.permute.xlu2 %322 }
  0x77   :  { %v1072_v12 = vsub.f32 %v1007_v42, %v212_v58  ;;  %v1075_v13 = vsub.f32 %v1009_v43, %v212_v58  ;;  %v1078_v14 = vsub.f32 %v1011_v41, %v212_v58  ;;  %v1081_v15 = vsub.f32 %v1013_v44, %v212_v58 }
  0x78   :  { %1310 = vst [vmem:[#allocation14_spill] sm:$0xff] %v1066_v9  ;;  %v1084_v8 = vsub.f32 %v1015_v2, %v212_v58  ;;  %v1087_v16 = vsub.f32 %v1017_v46, %v212_v58  ;;  %v1090_v17 = vsub.f32 %v1019_v1, %v212_v58  ;;  %v1093_v19 = vsub.f32 %v1021_v47, %v212_v58 }
  0x79   :  { %1311 = vst [vmem:[#allocation15_spill] sm:$0xff] %v1069_v10  ;;  %v367_v20 = vmul.f32 %v323_v11, %v276_v0  ;;  %v368_v21 = vmul.f32 %v323_v11, %v277_v48  ;;  %v369_v22 = vmul.f32 %v323_v11, %v278_v49  ;;  %v370_v23 = vmul.f32 %v323_v11, %v279_v50 }
  0x7a   :  { %v371_v24 = vmul.f32 %v323_v11, %v280_v51  ;;  %v372_v25 = vmul.f32 %v323_v11, %v281_v52  ;;  %v373_v26 = vmul.f32 %v323_v11, %v282_v18  ;;  %v374_v27 = vmul.f32 %v323_v11, %v283_v53 }
  0x7b   :  { %v423_v28 = vmul.f32 %v367_v20, %v276_v0  ;;  %v424_v29 = vmul.f32 %v368_v21, %v277_v48  ;;  %v425_v30 = vmul.f32 %v369_v22, %v278_v49  ;;  %v426_v31 = vmul.f32 %v370_v23, %v279_v50 }
  0x7c   :  { %v427_v32 = vmul.f32 %v371_v24, %v280_v51  ;;  %v428_v33 = vmul.f32 %v372_v25, %v281_v52  ;;  %v429_v34 = vmul.f32 %v373_v26, %v282_v18  ;;  %v430_v36 = vmul.f32 %v374_v27, %v283_v53  ;;  %v227_v37 = vpop.permute.xlu1 %226 }
  0x7d   :  { %v511_v38 = vmul.f32 1.442695, %v423_v28  ;;  %v513_v45 = vmul.f32 1.442695, %v424_v29  ;;  %v515_v57 = vmul.f32 1.442695, %v425_v30  ;;  %v1096_v58 = vsub.f32 %v1007_v42, %v227_v37  ;;  %v217_v0 = vpop.permute.xlu0 %216 }
  0x7e   :  { %v517_v35 = vmul.f32 1.442695, %v426_v31  ;;  %v519_v10 = vmul.f32 1.442695, %v427_v32  ;;  %v521_v9 = vmul.f32 1.442695, %v428_v33  ;;  %v1099_v11 = vsub.f32 %v1009_v43, %v227_v37 }
  0x7f   :  { %724 = vpow2.f32 %v511_v38  ;;  %v523_v48 = vmul.f32 1.442695, %v429_v34  ;;  %v525_v49 = vmul.f32 1.442695, %v430_v36  ;;  %v1102_v50 = vsub.f32 %v1011_v41, %v227_v37 }
  0x80   :  { %726 = vpow2.f32 %v513_v45  ;;  %v1105_v51 = vsub.f32 %v1013_v44, %v227_v37  ;;  %v1108_v52 = vsub.f32 %v1015_v2, %v227_v37  ;;  %v1111_v18 = vsub.f32 %v1017_v46, %v227_v37 }
  0x81   :  { %728 = vpow2.f32 %v515_v57  ;;  %v1114_v53 = vsub.f32 %v1019_v1, %v227_v37  ;;  %v1117_v20 = vsub.f32 %v1021_v47, %v227_v37  ;;  %v252_v21 = vsub.f32 %v1007_v42, %v217_v0 }
  0x82   :  { %730 = vpow2.f32 %v517_v35  ;;  %v253_v22 = vsub.f32 %v1009_v43, %v217_v0  ;;  %v254_v23 = vsub.f32 %v1011_v41, %v217_v0  ;;  %v255_v24 = vsub.f32 %v1013_v44, %v217_v0 }
  0x83   :  { %732 = vpow2.f32 %v519_v10  ;;  %v256_v25 = vsub.f32 %v1015_v2, %v217_v0  ;;  %v257_v26 = vsub.f32 %v1017_v46, %v217_v0  ;;  %v258_v27 = vsub.f32 %v1019_v1, %v217_v0 }
  0x84   :  { %734 = vpow2.f32 %v521_v9  ;;  %v259_v28 = vsub.f32 %v1021_v47, %v217_v0  ;;  %v343_v29 = vmul.f32 %v1005_v40, %v252_v21  ;;  %v344_v35 = vmul.f32 %v1005_v40, %v253_v22 }
  0x85   :  { %v725_v30 = vpop.eup %724  ;;  %736 = vpow2.f32 %v523_v48  ;;  %v345_v31 = vmul.f32 %v1005_v40, %v254_v23  ;;  %v346_v32 = vmul.f32 %v1005_v40, %v255_v24  ;;  %v347_v10 = vmul.f32 %v1005_v40, %v256_v25  ;;  %v303_v48 = vpop.permute.xlu1 %302 }
  0x86   :  { %v727_v33 = vpop.eup %726  ;;  %738 = vpow2.f32 %v525_v49  ;;  %v608_v34 = vmul.f32 %v725_v30, %v1031_v54  ;;  %v348_v9 = vmul.f32 %v1005_v40, %v257_v26  ;;  %v349_v36 = vmul.f32 %v1005_v40, %v258_v27 }
  0x87   :  { %v729_v37 = vpop.eup %728  ;;  %v609_v38 = vmul.f32 %v727_v33, %v1033_v55  ;;  %v350_v45 = vmul.f32 %v1005_v40, %v259_v28  ;;  %v399_v57 = vmul.f32 %v343_v29, %v252_v21  ;;  %v400_v0 = vmul.f32 %v344_v35, %v253_v22 }
  0x88   :  { %v731_v47 = vpop.eup %730  ;;  %v610_v1 = vmul.f32 %v729_v37, %v1035_v56  ;;  %664 = vst [vmem:[#allocation2 + $0x100] sm:$0xff] %v608_v34  ;;  %v401_v46 = vmul.f32 %v345_v31, %v254_v23  ;;  %v402_v49 = vmul.f32 %v346_v32, %v255_v24  ;;  %v403_v2 = vmul.f32 %v347_v10, %v256_v25 }
  0x89   :  { %v733_v30 = vpop.eup %732  ;;  %v611_v44 = vmul.f32 %v731_v47, %v1037_v39  ;;  %665 = vst [vmem:[#allocation2 + $0x108] sm:$0xff] %v609_v38  ;;  %v404_v41 = vmul.f32 %v348_v9, %v257_v26  ;;  %v405_v43 = vmul.f32 %v349_v36, %v258_v27  ;;  %v406_v42 = vmul.f32 %v350_v45, %v259_v28 }
  0x8a   :  { %v735_v33 = vpop.eup %734  ;;  %v612_v40 = vmul.f32 %v733_v30, %v1039_v59  ;;  %666 = vst [vmem:[#allocation2 + $0x110] sm:$0xff] %v610_v1  ;;  %v463_v21 = vmul.f32 1.442695, %v399_v57  ;;  %v465_v22 = vmul.f32 1.442695, %v400_v0  ;;  %v335_v29 = vmul.f32 %v303_v48, %v1072_v12  ;;  %v1157_v57 = vpop.permute.xlu0 %241 }
  0x8b   :  { %v737_v35 = vpop.eup %736  ;;  %v613_v23 = vmul.f32 %v735_v33, %v1041_v60  ;;  %667 = vst [vmem:[#allocation2 + $0x118] sm:$0xff] %v611_v44  ;;  %v467_v24 = vmul.f32 1.442695, %v401_v46  ;;  %v469_v25 = vmul.f32 1.442695, %v402_v49  ;;  %v336_v47 = vmul.f32 %v303_v48, %v1075_v13 }
  0x8c   :  { %v739_v31 = vpop.eup %738  ;;  %v614_v26 = vmul.f32 %v737_v35, %v1043_v61  ;;  %668 = vst [vmem:[#allocation2 + $0x120] sm:$0xff] %v612_v40  ;;  %740 = vpow2.f32 %v463_v21  ;;  %v471_v27 = vmul.f32 1.442695, %v403_v2  ;;  %v473_v28 = vmul.f32 1.442695, %v404_v41 }
  0x8d   :  { %v615_v1 = vmul.f32 %v739_v31, %v1045_v62  ;;  %669 = vst [vmem:[#allocation2 + $0x128] sm:$0xff] %v613_v23  ;;  %742 = vpow2.f32 %v465_v22  ;;  %v475_v32 = vmul.f32 1.442695, %v405_v43  ;;  %v477_v10 = vmul.f32 1.442695, %v406_v42 }
  0x8e   :  { %670 = vst [vmem:[#allocation2 + $0x130] sm:$0xff] %v614_v26  ;;  %744 = vpow2.f32 %v467_v24  ;;  %v337_v44 = vmul.f32 %v303_v48, %v1078_v14  ;;  %v338_v46 = vmul.f32 %v303_v48, %v1081_v15  ;;  %v339_v34 = vmul.f32 %v303_v48, %v1084_v8 }
  0x8f   :  { %671 = vst [vmem:[#allocation2 + $0x138] sm:$0xff] %v615_v1  ;;  %746 = vpow2.f32 %v469_v25  ;;  %v340_v9 = vmul.f32 %v303_v48, %v1087_v16  ;;  %v341_v41 = vmul.f32 %v303_v48, %v1090_v17  ;;  %v342_v2 = vmul.f32 %v303_v48, %v1093_v19 }
  0x90   :  { %748 = vpow2.f32 %v471_v27  ;;  %v391_v43 = vmul.f32 %v335_v29, %v1072_v12  ;;  %v392_v42 = vmul.f32 %v336_v47, %v1075_v13  ;;  %v393_v36 = vmul.f32 %v337_v44, %v1078_v14 }
  0x91   :  { %750 = vpow2.f32 %v473_v28  ;;  %v394_v37 = vmul.f32 %v338_v46, %v1081_v15  ;;  %v395_v38 = vmul.f32 %v339_v34, %v1084_v8  ;;  %v396_v45 = vmul.f32 %v340_v9, %v1087_v16  ;;  %v318_v15 = vpop.permute.xlu1 %317 }
  0x92   :  { %v741_v0 = vpop.eup %740  ;;  %752 = vpow2.f32 %v475_v32  ;;  %v397_v48 = vmul.f32 %v341_v41, %v1090_v17  ;;  %v398_v49 = vmul.f32 %v342_v2, %v1093_v19  ;;  %v447_v12 = vmul.f32 1.442695, %v391_v43 }
  0x93   :  { %v743_v30 = vpop.eup %742  ;;  %754 = vpow2.f32 %v477_v10  ;;  %v584_v13 = vmul.f32 %v741_v0, %v1031_v54  ;;  %v449_v14 = vmul.f32 1.442695, %v392_v42  ;;  %v451_v33 = vmul.f32 1.442695, %v393_v36  ;;  %v313_v0 = vpop.permute.xlu0 %312 }
  0x94   :  { %v745_v40 = vpop.eup %744  ;;  %v585_v8 = vmul.f32 %v743_v30, %v1033_v55  ;;  %756 = vpow2.f32 %v447_v12  ;;  %v453_v16 = vmul.f32 1.442695, %v394_v37  ;;  %v455_v21 = vmul.f32 1.442695, %v395_v38 }
  0x95   :  { %v747_v22 = vpop.eup %746  ;;  %v586_v29 = vmul.f32 %v745_v40, %v1035_v56  ;;  %640 = vst [vmem:[#allocation2 + $0x40] sm:$0xff] %v584_v13  ;;  %758 = vpow2.f32 %v449_v14  ;;  %v457_v17 = vmul.f32 1.442695, %v396_v45  ;;  %v459_v19 = vmul.f32 1.442695, %v397_v48 }
  0x96   :  { %v749_v35 = vpop.eup %748  ;;  %v587_v23 = vmul.f32 %v747_v22, %v1037_v39  ;;  %641 = vst [vmem:[#allocation2 + $0x48] sm:$0xff] %v585_v8  ;;  %760 = vpow2.f32 %v451_v33  ;;  %v461_v24 = vmul.f32 1.442695, %v398_v49  ;;  %v359_v25 = vmul.f32 %v318_v15, %v1096_v58 }
  0x97   :  { %v751_v47 = vpop.eup %750  ;;  %v588_v31 = vmul.f32 %v749_v35, %v1039_v59  ;;  %642 = vst [vmem:[#allocation2 + $0x50] sm:$0xff] %v586_v29  ;;  %762 = vpow2.f32 %v453_v16  ;;  %v360_v26 = vmul.f32 %v318_v15, %v1099_v11  ;;  %v361_v27 = vmul.f32 %v318_v15, %v1102_v50 }
  0x98   :  { %v753_v28 = vpop.eup %752  ;;  %v589_v1 = vmul.f32 %v751_v47, %v1041_v60  ;;  %643 = vst [vmem:[#allocation2 + $0x58] sm:$0xff] %v587_v23  ;;  %764 = vpow2.f32 %v455_v21  ;;  %v362_v32 = vmul.f32 %v318_v15, %v1105_v51  ;;  %v363_v10 = vmul.f32 %v318_v15, %v1108_v52 }
  0x99   :  { %v755_v44 = vpop.eup %754  ;;  %v590_v46 = vmul.f32 %v753_v28, %v1043_v61  ;;  %644 = vst [vmem:[#allocation2 + $0x60] sm:$0xff] %v588_v31  ;;  %766 = vpow2.f32 %v457_v17  ;;  %v364_v34 = vmul.f32 %v318_v15, %v1111_v18  ;;  %v365_v9 = vmul.f32 %v318_v15, %v1114_v53  ;;  %v1312_v28 = vld [vmem:[#allocation14_spill] sm:$0xff] }
  0x9a   :  { %v757_v41 = vpop.eup %756  ;;  %v591_v2 = vmul.f32 %v755_v44, %v1045_v62  ;;  %645 = vst [vmem:[#allocation2 + $0x68] sm:$0xff] %v589_v1  ;;  %768 = vpow2.f32 %v459_v19  ;;  %v366_v43 = vmul.f32 %v318_v15, %v1117_v20  ;;  %v415_v42 = vmul.f32 %v359_v25, %v1096_v58 }
  0x9b   :  { %v759_v36 = vpop.eup %758  ;;  %646 = vst [vmem:[#allocation2 + $0x70] sm:$0xff] %v590_v46  ;;  %770 = vpow2.f32 %v461_v24  ;;  %v576_v37 = vmul.f32 %v757_v41, %v1031_v54  ;;  %v416_v38 = vmul.f32 %v360_v26, %v1099_v11  ;;  %v417_v45 = vmul.f32 %v361_v27, %v1102_v50 }
  0x9c   :  { %v761_v48 = vpop.eup %760  ;;  %647 = vst [vmem:[#allocation2 + $0x78] sm:$0xff] %v591_v2  ;;  %v577_v49 = vmul.f32 %v759_v36, %v1033_v55  ;;  %v418_v12 = vmul.f32 %v362_v32, %v1105_v51  ;;  %v419_v30 = vmul.f32 %v363_v10, %v1108_v52  ;;  %v420_v58 = vmul.f32 %v364_v34, %v1111_v18  ;;  %v1313_v32 = vld [vmem:[#allocation15_spill] sm:$0xff] }
  0x9d   :  { %v763_v13 = vpop.eup %762  ;;  %v578_v14 = vmul.f32 %v761_v48, %v1035_v56  ;;  %632 = vst [vmem:[#allocation2] sm:$0xff] %v576_v37  ;;  %v421_v33 = vmul.f32 %v365_v9, %v1114_v53  ;;  %v422_v11 = vmul.f32 %v366_v43, %v1117_v20  ;;  %v495_v50 = vmul.f32 1.442695, %v415_v42 }
  0x9e   :  { %v765_v15 = vpop.eup %764  ;;  %v579_v40 = vmul.f32 %v763_v13, %v1037_v39  ;;  %633 = vst [vmem:[#allocation2 + $0x8] sm:$0xff] %v577_v49  ;;  %v497_v8 = vmul.f32 1.442695, %v416_v38  ;;  %v499_v16 = vmul.f32 1.442695, %v417_v45  ;;  %v351_v51 = vmul.f32 %v313_v0, %v1048_v63  ;;  %v1314_v49 = vld [vmem:[#allocation6_spill] sm:$0xff] }
  0x9f   :  { %v767_v52 = vpop.eup %766  ;;  %v580_v18 = vmul.f32 %v765_v15, %v1039_v59  ;;  %634 = vst [vmem:[#allocation2 + $0x10] sm:$0xff] %v578_v14  ;;  %772 = vpow2.f32 %v495_v50  ;;  %v501_v21 = vmul.f32 1.442695, %v418_v12  ;;  %v503_v22 = vmul.f32 1.442695, %v419_v30 }
  0xa0   :  { %v769_v29 = vpop.eup %768  ;;  %v581_v53 = vmul.f32 %v767_v52, %v1041_v60  ;;  %635 = vst [vmem:[#allocation2 + $0x18] sm:$0xff] %v579_v40  ;;  %774 = vpow2.f32 %v497_v8  ;;  %v505_v20 = vmul.f32 1.442695, %v420_v58  ;;  %v507_v17 = vmul.f32 1.442695, %v421_v33  ;;  %v333_v8 = vpop.permute.xlu1 %332  ;;  %v1316_v52 = vld [vmem:[#allocation8_spill] sm:$0xff] }
  0xa1   :  { %v771_v19 = vpop.eup %770  ;;  %v582_v35 = vmul.f32 %v769_v29, %v1043_v61  ;;  %636 = vst [vmem:[#allocation2 + $0x20] sm:$0xff] %v580_v18  ;;  %776 = vpow2.f32 %v499_v16  ;;  %v509_v23 = vmul.f32 1.442695, %v422_v11  ;;  %v352_v24 = vmul.f32 %v313_v0, %v1051_v3  ;;  %v1315_v16 = vld [vmem:[#allocation7_spill] sm:$0xff]  ;;  %v1317_v29 = vld [vmem:[#allocation9_spill] sm:$0xff] }
  0xa2   :  { %v583_v25 = vmul.f32 %v771_v19, %v1045_v62  ;;  %637 = vst [vmem:[#allocation2 + $0x28] sm:$0xff] %v581_v53  ;;  %778 = vpow2.f32 %v501_v21  ;;  %v353_v47 = vmul.f32 %v313_v0, %v1054_v4  ;;  %v354_v31 = vmul.f32 %v313_v0, %v1057_v5 }
  0xa3   :  { %638 = vst [vmem:[#allocation2 + $0x30] sm:$0xff] %v582_v35  ;;  %780 = vpow2.f32 %v503_v22  ;;  %v355_v26 = vmul.f32 %v313_v0, %v1060_v6  ;;  %v356_v27 = vmul.f32 %v313_v0, %v1063_v7  ;;  %v357_v1 = vmul.f32 %v313_v0, %v1312_v28  ;;  %v1319_v35 = vld [vmem:[#allocation11_spill] sm:$0xff] }
  0xa4   :  { %639 = vst [vmem:[#allocation2 + $0x38] sm:$0xff] %v583_v25  ;;  %782 = vpow2.f32 %v505_v20  ;;  %v358_v10 = vmul.f32 %v313_v0, %v1313_v32  ;;  %v407_v44 = vmul.f32 %v351_v51, %v1048_v63  ;;  %v408_v46 = vmul.f32 %v352_v24, %v1051_v3  ;;  %v1318_v20 = vld [vmem:[#allocation10_spill] sm:$0xff]  ;;  %v1320_v24 = vld [vmem:[#allocation12_spill] sm:$0xff] }
  0xa5   :  { %v773_v34 = vpop.eup %772  ;;  %784 = vpow2.f32 %v507_v17  ;;  %v409_v9 = vmul.f32 %v353_v47, %v1054_v4  ;;  %v410_v41 = vmul.f32 %v354_v31, %v1057_v5  ;;  %v411_v2 = vmul.f32 %v355_v26, %v1060_v6  ;;  %v1321_v47 = vld [vmem:[#allocation13_spill] sm:$0xff] }
  0xa6   :  { %v775_v43 = vpop.eup %774  ;;  %786 = vpow2.f32 %v509_v23  ;;  %v600_v42 = vmul.f32 %v773_v34, %v1031_v54  ;;  %v412_v36 = vmul.f32 %v356_v27, %v1063_v7  ;;  %v413_v37 = vmul.f32 %v357_v1, %v1312_v28 }
  0xa7   :  { %v777_v38 = vpop.eup %776  ;;  %v601_v63 = vmul.f32 %v775_v43, %v1033_v55  ;;  %v414_v3 = vmul.f32 %v358_v10, %v1313_v32  ;;  %v479_v45 = vmul.f32 1.442695, %v407_v44  ;;  %v481_v0 = vmul.f32 1.442695, %v408_v46 }
  0xa8   :  { %v779_v4 = vpop.eup %778  ;;  %v602_v5 = vmul.f32 %v777_v38, %v1035_v56  ;;  %656 = vst [vmem:[#allocation2 + $0xc0] sm:$0xff] %v600_v42  ;;  %v483_v6 = vmul.f32 1.442695, %v409_v9  ;;  %v485_v48 = vmul.f32 1.442695, %v410_v41  ;;  %v292_v12 = vsub.f32 %v1314_v49, %v1157_v57 }
  0xa9   :  { %v781_v30 = vpop.eup %780  ;;  %v603_v7 = vmul.f32 %v779_v4, %v1037_v39  ;;  %657 = vst [vmem:[#allocation2 + $0xc8] sm:$0xff] %v601_v63  ;;  %788 = vpow2.f32 %v479_v45  ;;  %v487_v58 = vmul.f32 1.442695, %v411_v2  ;;  %v489_v13 = vmul.f32 1.442695, %v412_v36 }
  0xaa   :  { %v783_v14 = vpop.eup %782  ;;  %v604_v33 = vmul.f32 %v781_v30, %v1039_v59  ;;  %658 = vst [vmem:[#allocation2 + $0xd0] sm:$0xff] %v602_v5  ;;  %790 = vpow2.f32 %v481_v0  ;;  %v491_v11 = vmul.f32 1.442695, %v413_v37  ;;  %v493_v50 = vmul.f32 1.442695, %v414_v3 }
  0xab   :  { %v785_v15 = vpop.eup %784  ;;  %v605_v40 = vmul.f32 %v783_v14, %v1041_v60  ;;  %659 = vst [vmem:[#allocation2 + $0xd8] sm:$0xff] %v603_v7  ;;  %792 = vpow2.f32 %v483_v6  ;;  %v293_v51 = vsub.f32 %v1315_v16, %v1157_v57  ;;  %v294_v18 = vsub.f32 %v1316_v52, %v1157_v57 }
  0xac   :  { %v787_v21 = vpop.eup %786  ;;  %v606_v22 = vmul.f32 %v785_v15, %v1043_v61  ;;  %660 = vst [vmem:[#allocation2 + $0xe0] sm:$0xff] %v604_v33  ;;  %794 = vpow2.f32 %v485_v48  ;;  %v295_v53 = vsub.f32 %v1317_v29, %v1157_v57  ;;  %v296_v17 = vsub.f32 %v1318_v20, %v1157_v57 }
  0xad   :  { %v607_v19 = vmul.f32 %v787_v21, %v1045_v62  ;;  %661 = vst [vmem:[#allocation2 + $0xe8] sm:$0xff] %v605_v40  ;;  %796 = vpow2.f32 %v487_v58  ;;  %v297_v23 = vsub.f32 %v1319_v35, %v1157_v57  ;;  %v298_v25 = vsub.f32 %v1320_v24, %v1157_v57  ;;  %v1322_v58 = vld [vmem:[#allocation5_spill] sm:$0xff] }
  0xae   :  { %662 = vst [vmem:[#allocation2 + $0xf0] sm:$0xff] %v606_v22  ;;  %798 = vpow2.f32 %v489_v13  ;;  %v299_v31 = vsub.f32 %v1321_v47, %v1157_v57  ;;  %v383_v26 = vmul.f32 %v333_v8, %v292_v12  ;;  %v384_v27 = vmul.f32 %v333_v8, %v293_v51 }
  0xaf   :  { %v789_v28 = vpop.eup %788  ;;  %663 = vst [vmem:[#allocation2 + $0xf8] sm:$0xff] %v607_v19  ;;  %800 = vpow2.f32 %v491_v11  ;;  %v385_v1 = vmul.f32 %v333_v8, %v294_v18  ;;  %v386_v32 = vmul.f32 %v333_v8, %v295_v53  ;;  %v387_v10 = vmul.f32 %v333_v8, %v296_v17 }
  0xb0   :  { %v791_v44 = vpop.eup %790  ;;  %802 = vpow2.f32 %v493_v50  ;;  %v592_v46 = vmul.f32 %v789_v28, %v1031_v54  ;;  %v388_v34 = vmul.f32 %v333_v8, %v297_v23  ;;  %v389_v9 = vmul.f32 %v333_v8, %v298_v25 }
  0xb1   :  { %v793_v41 = vpop.eup %792  ;;  %v593_v2 = vmul.f32 %v791_v44, %v1033_v55  ;;  %v390_v43 = vmul.f32 %v333_v8, %v299_v31  ;;  %v439_v42 = vmul.f32 %v383_v26, %v292_v12  ;;  %v440_v57 = vmul.f32 %v384_v27, %v293_v51 }
  0xb2   :  { %v795_v36 = vpop.eup %794  ;;  %v594_v37 = vmul.f32 %v793_v41, %v1035_v56  ;;  %648 = vst [vmem:[#allocation2 + $0x80] sm:$0xff] %v592_v46  ;;  %v441_v38 = vmul.f32 %v385_v1, %v294_v18  ;;  %v442_v63 = vmul.f32 %v386_v32, %v295_v53  ;;  %v443_v3 = vmul.f32 %v387_v10, %v296_v17  ;;  %v328_v53 = vpop.permute.xlu0 %327 }
  0xb3   :  { %v797_v45 = vpop.eup %796  ;;  %v595_v0 = vmul.f32 %v795_v36, %v1037_v39  ;;  %649 = vst [vmem:[#allocation2 + $0x88] sm:$0xff] %v593_v2  ;;  %v444_v4 = vmul.f32 %v388_v34, %v297_v23  ;;  %v445_v5 = vmul.f32 %v389_v9, %v298_v25  ;;  %v446_v6 = vmul.f32 %v390_v43, %v299_v31 }
  0xb4   :  { %v799_v48 = vpop.eup %798  ;;  %v596_v30 = vmul.f32 %v797_v45, %v1039_v59  ;;  %650 = vst [vmem:[#allocation2 + $0x90] sm:$0xff] %v594_v37  ;;  %v543_v12 = vmul.f32 1.442695, %v439_v42  ;;  %v545_v7 = vmul.f32 1.442695, %v440_v57  ;;  %v284_v13 = vsub.f32 %v1314_v49, %v1322_v58 }
  0xb5   :  { %v801_v14 = vpop.eup %800  ;;  %v597_v33 = vmul.f32 %v799_v48, %v1041_v60  ;;  %651 = vst [vmem:[#allocation2 + $0x98] sm:$0xff] %v595_v0  ;;  %v547_v11 = vmul.f32 1.442695, %v441_v38  ;;  %v549_v50 = vmul.f32 1.442695, %v442_v63  ;;  %v285_v15 = vsub.f32 %v1315_v16, %v1322_v58 }
  0xb6   :  { %v803_v40 = vpop.eup %802  ;;  %v598_v8 = vmul.f32 %v801_v14, %v1043_v61  ;;  %652 = vst [vmem:[#allocation2 + $0xa0] sm:$0xff] %v596_v30  ;;  %804 = vpow2.f32 %v543_v12  ;;  %v551_v51 = vmul.f32 1.442695, %v443_v3  ;;  %v553_v18 = vmul.f32 1.442695, %v444_v4 }
  0xb7   :  { %v599_v21 = vmul.f32 %v803_v40, %v1045_v62  ;;  %653 = vst [vmem:[#allocation2 + $0xa8] sm:$0xff] %v597_v33  ;;  %806 = vpow2.f32 %v545_v7  ;;  %v555_v49 = vmul.f32 1.442695, %v445_v5  ;;  %v557_v22 = vmul.f32 1.442695, %v446_v6 }
  0xb8   :  { %654 = vst [vmem:[#allocation2 + $0xb0] sm:$0xff] %v598_v8  ;;  %808 = vpow2.f32 %v547_v11  ;;  %v286_v17 = vsub.f32 %v1316_v52, %v1322_v58  ;;  %v287_v16 = vsub.f32 %v1317_v29, %v1322_v58  ;;  %v288_v19 = vsub.f32 %v1318_v20, %v1322_v58 }
  0xb9   :  { %655 = vst [vmem:[#allocation2 + $0xb8] sm:$0xff] %v599_v21  ;;  %810 = vpow2.f32 %v549_v50  ;;  %v289_v23 = vsub.f32 %v1319_v35, %v1322_v58  ;;  %v290_v25 = vsub.f32 %v1320_v24, %v1322_v58  ;;  %v291_v31 = vsub.f32 %v1321_v47, %v1322_v58 }
  0xba   :  { %812 = vpow2.f32 %v551_v51  ;;  %v375_v26 = vmul.f32 %v328_v53, %v284_v13  ;;  %v376_v52 = vmul.f32 %v328_v53, %v285_v15  ;;  %v377_v27 = vmul.f32 %v328_v53, %v286_v17 }
  0xbb   :  { %814 = vpow2.f32 %v553_v18  ;;  %v378_v29 = vmul.f32 %v328_v53, %v287_v16  ;;  %v379_v28 = vmul.f32 %v328_v53, %v288_v19  ;;  %v380_v1 = vmul.f32 %v328_v53, %v289_v23 }
  0xbc   :  { %v805_v20 = vpop.eup %804  ;;  %816 = vpow2.f32 %v555_v49  ;;  %v381_v32 = vmul.f32 %v328_v53, %v290_v25  ;;  %v382_v10 = vmul.f32 %v328_v53, %v291_v31  ;;  %v431_v44 = vmul.f32 %v375_v26, %v284_v13 }
  0xbd   :  { %v807_v35 = vpop.eup %806  ;;  %818 = vpow2.f32 %v557_v22  ;;  %v624_v24 = vmul.f32 %v805_v20, %v1031_v54  ;;  %v432_v46 = vmul.f32 %v376_v52, %v285_v15  ;;  %v433_v34 = vmul.f32 %v377_v27, %v286_v17 }
  0xbe   :  { %v809_v47 = vpop.eup %808  ;;  %v625_v9 = vmul.f32 %v807_v35, %v1033_v55  ;;  %v434_v41 = vmul.f32 %v378_v29, %v287_v16  ;;  %v435_v2 = vmul.f32 %v379_v28, %v288_v19  ;;  %v436_v43 = vmul.f32 %v380_v1, %v289_v23 }
  0xbf   :  { %v811_v42 = vpop.eup %810  ;;  %v626_v57 = vmul.f32 %v809_v47, %v1035_v56  ;;  %680 = vst [vmem:[#allocation2 + $0x180] sm:$0x3] %v624_v24  ;;  %v437_v36 = vmul.f32 %v381_v32, %v290_v25  ;;  %v527_v37 = vmul.f32 1.442695, %v431_v44  ;;  %v438_v3 = vmul.f32 %v382_v10, %v291_v31 }
  0xc0   :  { %v813_v38 = vpop.eup %812  ;;  %v627_v63 = vmul.f32 %v811_v42, %v1037_v39  ;;  %681 = vst [vmem:[#allocation2 + $0x188] sm:$0x3] %v625_v9  ;;  %v529_v45 = vmul.f32 1.442695, %v432_v46  ;;  %v531_v0 = vmul.f32 1.442695, %v433_v34 }
  0xc1   :  { %v815_v4 = vpop.eup %814  ;;  %v628_v5 = vmul.f32 %v813_v38, %v1039_v59  ;;  %682 = vst [vmem:[#allocation2 + $0x190] sm:$0x3] %v626_v57  ;;  %820 = vpow2.f32 %v527_v37  ;;  %v533_v6 = vmul.f32 1.442695, %v434_v41  ;;  %v535_v48 = vmul.f32 1.442695, %v435_v2 }
  0xc2   :  { %v817_v30 = vpop.eup %816  ;;  %v629_v12 = vmul.f32 %v815_v4, %v1041_v60  ;;  %683 = vst [vmem:[#allocation2 + $0x198] sm:$0x3] %v627_v63  ;;  %822 = vpow2.f32 %v529_v45  ;;  %v537_v7 = vmul.f32 1.442695, %v436_v43  ;;  %v539_v14 = vmul.f32 1.442695, %v437_v36 }
  0xc3   :  { %v819_v58 = vpop.eup %818  ;;  %v630_v13 = vmul.f32 %v817_v30, %v1043_v61  ;;  %684 = vst [vmem:[#allocation2 + $0x1a0] sm:$0x3] %v628_v5  ;;  %824 = vpow2.f32 %v531_v0  ;;  %v541_v11 = vmul.f32 1.442695, %v438_v3 }
  0xc4   :  { %v631_v33 = vmul.f32 %v819_v58, %v1045_v62  ;;  %685 = vst [vmem:[#allocation2 + $0x1a8] sm:$0x3] %v629_v12  ;;  %826 = vpow2.f32 %v533_v6 }
  0xc5   :  { %686 = vst [vmem:[#allocation2 + $0x1b0] sm:$0x3] %v630_v13  ;;  %828 = vpow2.f32 %v535_v48 }
  0xc6   :  { %687 = vst [vmem:[#allocation2 + $0x1b8] sm:$0x3] %v631_v33  ;;  %830 = vpow2.f32 %v537_v7 }
  0xc7   :  { %v821_v50 = vpop.eup %820  ;;  %832 = vpow2.f32 %v539_v14 }
  0xc8   :  { %v823_v15 = vpop.eup %822  ;;  %834 = vpow2.f32 %v541_v11  ;;  %v616_v40 = vmul.f32 %v821_v50, %v1031_v54 }
  0xc9   :  { %v825_v8 = vpop.eup %824  ;;  %v617_v51 = vmul.f32 %v823_v15, %v1033_v55 }
  0xca   :  { %v827_v18 = vpop.eup %826  ;;  %v618_v21 = vmul.f32 %v825_v8, %v1035_v56  ;;  %672 = vst [vmem:[#allocation2 + $0x140] sm:$0xff] %v616_v40 }
  0xcb   :  { %v829_v49 = vpop.eup %828  ;;  %v619_v22 = vmul.f32 %v827_v18, %v1037_v39  ;;  %673 = vst [vmem:[#allocation2 + $0x148] sm:$0xff] %v617_v51 }
  0xcc   :  { %v831_v53 = vpop.eup %830  ;;  %v620_v54 = vmul.f32 %v829_v49, %v1039_v59  ;;  %674 = vst [vmem:[#allocation2 + $0x150] sm:$0xff] %v618_v21 }
  0xcd   :  { %v833_v17 = vpop.eup %832  ;;  %v621_v55 = vmul.f32 %v831_v53, %v1041_v60  ;;  %675 = vst [vmem:[#allocation2 + $0x158] sm:$0xff] %v619_v22 }
  0xce   :  { %v835_v56 = vpop.eup %834  ;;  %v622_v16 = vmul.f32 %v833_v17, %v1043_v61  ;;  %676 = vst [vmem:[#allocation2 + $0x160] sm:$0xff] %v620_v54 }
  0xcf   :  { %v623_v39 = vmul.f32 %v835_v56, %v1045_v62  ;;  %677 = vst [vmem:[#allocation2 + $0x168] sm:$0xff] %v621_v55 }
  0xd0   :  { %678 = vst [vmem:[#allocation2 + $0x170] sm:$0xff] %v622_v16 }
  0xd1   :  { %679 = vst [vmem:[#allocation2 + $0x178] sm:$0xff] %v623_v39 }
  0xd2   :  { %700 = dma.vmem_to_hbm [thread:$0]  %s693_s13, 7168, %s695_s16, [#allocation3], %s870_s3, %s870_s3, %s871_s17  }
  0xd3   :  { %860 = dma.done.wait [#allocation3], 7168  }
  0xd4   :  { %861 = vsyncadd [#allocation3], 4294960128 }
  0xd5   :  { %705 = vsyncpa [#allocation3], 1 }

</bundles_post_ra>
